<compile_context>
chip_gen: v5e
topology: v5e:2x2
jax: 0.10.0
libtpu: 0.0.40
codegen_flags: <defaults>
</compile_context>

<pallas_src>
import functools

import numpy as np
import jax
import jax.numpy as jnp
from jax import lax
from jax.experimental import pallas as pl
from jax.experimental.pallas import tpu as pltpu


def _round_up(x, m):
    return ((x + m - 1) // m) * m


@functools.lru_cache(maxsize=1)
def _vmem_budget():
    """(vmem_limit_bytes, conv output-block budget bytes), generation aware.

    v5e/v6e have 128 MiB physical VMEM -> raise the scoped limit to 96 MiB and
    use larger conv output blocks; v7x (64 MiB) and unknown chips keep the
    conservative settings.
    """
    try:
        cap = pltpu.get_tpu_info().vmem_capacity_bytes
    except Exception:  # interpret mode / older jax / query unavailable
        cap = 0
    if cap >= 100 * 1024 * 1024:
        return 96 * 1024 * 1024, 8 * 1024 * 1024
    return 48 * 1024 * 1024, 4 * 1024 * 1024


# ----------------------------------------------------------------------------
# Kernel 1: fused Conv3d(1, C, k, padding=1) + bias + ReLU  (no HBM im2col)
#
# out[i1, i2, i3*C + co] = relu(bias[co] +
#     sum_{a,b} ( xp[i1+a, i2+b, :] @ band[a*k+b] )[i3*C + co] )
# where band[ab][j, i3*C+co] = w[a, b, j-i3, co] for 0 <= j-i3 < k else 0.
# The dot runs in bf16 (f32 accumulation).
# ----------------------------------------------------------------------------
def _conv_band_kernel(xp_ref, wb_ref, bb_ref, o_ref, *, t1, d2, d3, k):
    i = pl.program_id(1)
    row0 = pl.multiple_of(i * t1, t1)
    acc = None
    for a in range(k):
        for b in range(k):
            # (t1, d2, d3p) window of the padded volume: dynamic offset only on
            # an untiled dim, static offset on the sublane dim, full lane dim.
            y = xp_ref[0, pl.ds(row0 + a, t1), pl.ds(b, d2), :]
            y2 = y.reshape(t1 * d2, y.shape[-1]).astype(jnp.bfloat16)
            part = jnp.dot(y2, wb_ref[a * k + b],
                           preferred_element_type=jnp.float32)
            acc = part if acc is None else acc + part
    o_ref[0] = jnp.maximum(acc + bb_ref[...], 0.0).astype(o_ref.dtype)


def _build_band_weights(weight, d3, k):
    """weight: (C, 1, k, k, k) -> bf16 band matrices (k*k, d3+2*pad, d3*C)."""
    c_dim = weight.shape[0]
    pad = 1 if k == 3 else 0
    d3p = d3 + 2 * pad
    w = jnp.transpose(weight.reshape(c_dim, k, k, k), (1, 2, 3, 0))  # (k,k,k,C)
    w2 = w.reshape(k * k, k, c_dim)                                  # (k^2,k,C)
    j = jnp.arange(d3p)[:, None]
    i3 = jnp.arange(d3)[None, :]
    d = j - i3                                                       # (d3p,d3)
    valid = (d >= 0) & (d < k)
    band = w2[:, jnp.clip(d, 0, k - 1), :]                           # (k^2,d3p,d3,C)
    band = band * valid[None, :, :, None].astype(band.dtype)
    return band.reshape(k * k, d3p, d3 * c_dim).astype(jnp.bfloat16)


def _pick_t1(d1, d2, d3, c_dim, out_bytes, b_sz, budget_bytes):
    """Largest legal D1-slab whose output block fits the budget.

    Prefers a choice with >= 4 parallel grid blocks overall so a two-core chip
    (v7x) gets >= 2 blocks per TensorCore, and keeps the bf16 output block's
    sublane extent a multiple of 16 (or the full extent).
    """
    per_row = d2 * d3 * c_dim * out_bytes
    cap = max(1, budget_bytes // max(per_row, 1))
    legal = [t for t in range(1, d1 + 1)
             if d1 % t == 0 and ((t * d2) % 16 == 0 or t == d1)]
    if not legal:
        legal = [d1]
    # NOTE: if even the smallest legal tile exceeds the budget we still take it
    # (full-extent block) -- see review correctness note; the explicit
    # vmem_limit_bytes below then governs whether it compiles.
    fitting = [t for t in legal if t <= cap] or [min(legal)]
    t1 = max(fitting)
    if b_sz * (d1 // t1) < 4:
        smaller = [t for t in fitting if b_sz * (d1 // t) >= 4]
        if smaller:
            t1 = max(smaller)
    return t1


def conv3d_relu_pallas(x, weight, bias, *, k=3):
    """x: (B, D1, D2, D3) -> relu(conv3d(x) + bias) flattened to (B, N, C) bf16."""
    b_sz, d1, d2, d3 = x.shape
    c_dim = weight.shape[0]
    pad = 1 if k == 3 else 0
    d1p, d2p, d3p = d1 + 2 * pad, d2 + 2 * pad, d3 + 2 * pad
    xp = jnp.pad(x.astype(jnp.float32),
                 ((0, 0), (pad, pad), (pad, pad), (pad, pad)))
    wband = _build_band_weights(weight.astype(jnp.float32), d3, k)   # bf16
    bband = jnp.tile(bias.astype(jnp.float32), d3).reshape(1, d3 * c_dim)
    vmem_limit, blk_budget = _vmem_budget()
    t1 = _pick_t1(d1, d2, d3, c_dim, out_bytes=2, b_sz=b_sz,
                  budget_bytes=blk_budget)

    kernel = functools.partial(_conv_band_kernel, t1=t1, d2=d2, d3=d3, k=k)
    out = pl.pallas_call(
        kernel,
        out_shape=jax.ShapeDtypeStruct((b_sz, d1 * d2, d3 * c_dim),
                                       jnp.bfloat16),
        grid_spec=pltpu.PrefetchScalarGridSpec(
            num_scalar_prefetch=0,
            grid=(b_sz, d1 // t1),
            in_specs=[
                # Whole padded volume per batch, resident across the slab axis.
                pl.BlockSpec((1, d1p, d2p, d3p), lambda b, i: (b, 0, 0, 0)),
                # TODO(synk): on v7x consider pipeline_mode=pl.Buffered(1) for
                # this constant-index resident weight block to halve its VMEM.
                pl.BlockSpec((k * k, d3p, d3 * c_dim), lambda b, i: (0, 0, 0)),
                pl.BlockSpec((1, d3 * c_dim), lambda b, i: (0, 0)),
            ],
            out_specs=pl.BlockSpec((1, t1 * d2, d3 * c_dim),
                                   lambda b, i: (b, i, 0)),
        ),
        compiler_params=pltpu.CompilerParams(
            dimension_semantics=("parallel", "parallel"),
            vmem_limit_bytes=vmem_limit),
    )(xp, wband, bband)
    # (B, D1*D2, D3*C) is contiguous in (i1, i2, i3, co) order -> free reshape.
    return out.reshape(b_sz, d1 * d2 * d3, c_dim)


# ----------------------------------------------------------------------------
# Kernel 2: scatter_mean of (B, N, C) features into (B, C, num_cells) cells.
# Cell axis is R-tiled; the chunk axis is data-dependent via a scalar-prefetch
# chunk-start table so non-overlapping chunks are never DMA'd; counts go to a
# separate small accumulator (no 129-lane concat).
# ----------------------------------------------------------------------------
def _scatter_mean_kernel(lo_ref, hi_ref, start_ref, idx_ref, c_ref, out_ref,
                         acc_ref, cnt_ref, *, r_tile):
    b = pl.program_id(0)
    r = pl.program_id(1)
    j = pl.program_id(2)

    @pl.when(j == 0)
    def _init():
        acc_ref[...] = jnp.zeros_like(acc_ref)
        cnt_ref[...] = jnp.zeros_like(cnt_ref)

    chunk = start_ref[b, r] + j            # actual chunk visited this step
    tile_lo = r * r_tile
    overlaps = jnp.logical_and(hi_ref[b, chunk] >= tile_lo,
                               lo_ref[b, chunk] < tile_lo + r_tile)

    @pl.when(overlaps)
    def _accumulate():
        feat = c_ref[0]                                      # (tn, C) bf16
        tn = feat.shape[0]
        rel = idx_ref[0] - tile_lo                           # tile-relative idx
        cols = lax.broadcasted_iota(jnp.int32, (tn, r_tile), 1)
        onehot = (cols == rel).astype(jnp.bfloat16)          # (tn, r_tile)
        # TODO(synk): window / strip-mine the one-hot to this chunk's [lo, hi]
        # range; r_tile is kept moderate instead so wasted columns stay small.
        # (C, r_tile) += feat^T @ onehot   (bf16 MXU, f32 accumulate)
        acc_ref[...] += lax.dot_general(
            feat, onehot, (((0,), (0,)), ((), ())),
            preferred_element_type=jnp.float32)
        # Counts: tiny M=8 dot instead of a 129-lane feature concat.
        ones = jnp.ones((8, tn), jnp.bfloat16)
        cnt_ref[...] += lax.dot_general(
            ones, onehot, (((1,), (0,)), ((), ())),
            preferred_element_type=jnp.float32)

    @pl.when(j == pl.num_programs(2) - 1)
    def _finalize():
        cnt = cnt_ref[0:1, :]
        out_ref[0] = acc_ref[...] * pl.reciprocal(jnp.maximum(cnt, 1.0),
                                                  approx=True)


def scatter_mean_pallas(c_feat, index, num_cells, *, tn=256, r_tile=2048):
    """c_feat: (B, N, C), index: (B, N) int -> (B, C, num_cells) f32.

    Matches torch_scatter.scatter_mean(c.permute(0,2,1), index,
    out=zeros(B, C, num_cells)) (untouched cells stay 0).  Features are
    truncated to bf16 for the MXU (f32 accumulation) and the mean divide uses
    the EUP approximate reciprocal -- an intentional ~1e-3 precision trade;
    counts stay exact.

    NOTE: the data-dependent grid extent (max_chunks) needs concrete index
    data, so this wrapper must run eagerly (not under an outer jit).
    """
    b_sz, n, c_dim = c_feat.shape
    tn = max(16, min(tn, _round_up(n, 16)))
    n_pad = (-n) % tn
    n_padded = n + n_pad
    r_tile = min(r_tile, _round_up(num_cells, 128))
    cells_p = _round_up(num_cells, r_tile)
    n_tiles = cells_p // r_tile

    # Padded voxels get index -1: they never match a cell column, so they are
    # invisible to both the feature sums and the counts (load-bearing!).
    idx_p = jnp.pad(index.astype(jnp.int32), ((0, 0), (0, n_pad)),
                    constant_values=-1)
    c_p = jnp.pad(c_feat.astype(jnp.bfloat16), ((0, 0), (0, n_pad), (0, 0)))
    n_chunks = n_padded // tn
    idx_chunks = idx_p.reshape(b_sz, n_chunks, tn)
    lo = jnp.min(idx_chunks, axis=2).astype(jnp.int32)      # (B, n_chunks)
    hi = jnp.max(idx_chunks, axis=2).astype(jnp.int32)

    # Per (batch, R-tile): first / last chunk whose [lo, hi] range can touch
    # the tile.  With the banded voxel order this window is tight, so the j
    # grid axis only spans max_chunks (<< n_chunks); every other chunk is
    # never even DMA'd for this tile (data-dependent index_map below).
    tiles_lo = jnp.arange(n_tiles, dtype=jnp.int32) * r_tile
    ov = ((hi[:, None, :] >= tiles_lo[None, :, None]) &
          (lo[:, None, :] < (tiles_lo[None, :, None] + r_tile)))
    any_ov = jnp.any(ov, axis=2)
    first = jnp.where(any_ov, jnp.argmax(ov, axis=2), 0)
    last = jnp.where(any_ov,
                     (n_chunks - 1) - jnp.argmax(ov[:, :, ::-1], axis=2), -1)
    count = jnp.maximum(last - first + 1, 0)
    max_chunks = int(jnp.max(count))            # static grid extent
    max_chunks = min(max(max_chunks, 1), n_chunks)
    # Clamp so start + j never walks past the last chunk; the in-kernel
    # overlap test handles any extra chunks the clamping pulls into the window.
    start = jnp.clip(first, 0, n_chunks - max_chunks).astype(jnp.int32)

    vmem_limit, _ = _vmem_budget()
    kernel = functools.partial(_scatter_mean_kernel, r_tile=r_tile)
    out = pl.pallas_call(
        kernel,
        out_shape=jax.ShapeDtypeStruct((b_sz, c_dim, cells_p), jnp.float32),
        grid_spec=pltpu.PrefetchScalarGridSpec(
            num_scalar_prefetch=3,
            grid=(b_sz, n_tiles, max_chunks),
            in_specs=[
                pl.BlockSpec((1, tn, 1),
                             lambda b, r, j, _lo, _hi, st:
                             (b, st[b, r] + j, 0)),
                pl.BlockSpec((1, tn, c_dim),
                             lambda b, r, j, _lo, _hi, st:
                             (b, st[b, r] + j, 0)),
            ],
            out_specs=pl.BlockSpec((1, c_dim, r_tile),
                                   lambda b, r, j, _lo, _hi, st: (b, 0, r)),
            scratch_shapes=[pltpu.VMEM((c_dim, r_tile), jnp.float32),
                            pltpu.VMEM((8, r_tile), jnp.float32)],
        ),
        compiler_params=pltpu.CompilerParams(
            dimension_semantics=("parallel", "parallel", "arbitrary"),
            vmem_limit_bytes=vmem_limit),
    )(lo, hi, start, idx_p[..., None], c_p)
    if cells_p != num_cells:
        out = out[:, :, :num_cells]
    return out


# ----------------------------------------------------------------------------
# Plain-JAX glue (coordinate grids, indices) — matches the PyTorch code
# ----------------------------------------------------------------------------
def _build_p(b_sz, d1, d2, d3):
    c1 = jnp.linspace(-0.5, 0.5, d1)
    c2 = jnp.linspace(-0.5, 0.5, d2)
    c3 = jnp.linspace(-0.5, 0.5, d3)
    g1, g2, g3 = jnp.meshgrid(c1, c2, c3, indexing="ij")
    p = jnp.stack([g1, g2, g3], axis=-1).reshape(1, d1 * d2 * d3, 3)
    return jnp.broadcast_to(p, (b_sz, d1 * d2 * d3, 3)).astype(jnp.float32)


def _plane_index(p, plane, reso, padding):
    if plane == "xz":
        xy = jnp.stack([p[:, :, 0], p[:, :, 2]], axis=-1)
    elif plane == "xy":
        xy = jnp.stack([p[:, :, 0], p[:, :, 1]], axis=-1)
    else:  # 'yz'
        xy = jnp.stack([p[:, :, 1], p[:, :, 2]], axis=-1)
    xy = xy / (1.0 + padding + 10e-4) + 0.5       # normalize_coordinate
    xy = jnp.clip(xy, 0.0, 1.0 - 10e-6)
    xi = (xy * reso).astype(jnp.int32)            # .long() truncation (>=0)
    return xi[:, :, 0] + reso * xi[:, :, 1]       # coordinate2index (2d)


def _grid_index(p, reso, padding):
    pn = p / (1.0 + padding + 10e-4) + 0.5        # normalize_3d_coordinate
    pn = jnp.clip(pn, 0.0, 1.0 - 10e-6)
    xi = (pn * reso).astype(jnp.int32)
    return xi[:, :, 0] + reso * (xi[:, :, 1] + reso * xi[:, :, 2])


# Which spatial axis of (B, D1, D2, D3) feeds the most-significant digit of the
# cell index for each plane type (p[...,0]<-D1, p[...,1]<-D2, p[...,2]<-D3).
_MSB_SPATIAL_AXIS = {"xz": 3, "xy": 2, "yz": 3, "grid": 3}


def _reorder_for_banding(p, c, dims, plane):
    """Permute voxel order so the index MSB coordinate varies slowest.

    scatter_mean is permutation invariant, so this is a pure layout change; it
    makes per-chunk [min, max] index ranges narrow, which keeps the
    data-dependent chunk window per R tile small.
    """
    b_sz, n, _ = p.shape
    d1, d2, d3 = dims
    ax = _MSB_SPATIAL_AXIS[plane]
    order = (0, ax) + tuple(a for a in (1, 2, 3) if a != ax) + (4,)
    p5 = p.reshape(b_sz, d1, d2, d3, 3).transpose(order).reshape(b_sz, n, 3)
    c5 = c.reshape(b_sz, d1, d2, d3, -1).transpose(order).reshape(b_sz, n, -1)
    return p5, c5


# ----------------------------------------------------------------------------
# The module
# ----------------------------------------------------------------------------
class LocalVoxelEncoderPallas:
    def __init__(self, dim=3, c_dim=128, plane_resolution=512,
                 grid_resolution=None, plane_type="xz", kernel_size=3,
                 padding=0.1, key=None, scatter_tn=256, scatter_r_tile=2048):
        self.c_dim = c_dim
        self.reso_plane = plane_resolution
        self.reso_grid = grid_resolution
        self.plane_type = plane_type
        self.padding = padding
        self.scatter_tn = scatter_tn
        self.scatter_r_tile = scatter_r_tile
        self._k = 1 if kernel_size == 1 else 3
        if key is None:
            key = jax.random.PRNGKey(0)
        kw, kb = jax.random.split(key)
        fan_in = self._k ** 3
        bound = 1.0 / np.sqrt(fan_in)
        # deterministic PyTorch-like uniform init; synthetic weights, no ckpt
        self.weight = jax.random.uniform(
            kw, (c_dim, 1, self._k, self._k, self._k),
            minval=-bound, maxval=bound, dtype=jnp.float32)
        self.bias = jax.random.uniform(kb, (c_dim,), minval=-bound,
                                       maxval=bound, dtype=jnp.float32)
        # TODO(synk): UNet / UNet3D submodules not implemented (defaults
        # unet=False, unet3d=False so they are None and never run here).

    def generate_plane_features(self, p, c, plane="xz"):
        index = _plane_index(p, plane, self.reso_plane, self.padding)
        fea = scatter_mean_pallas(c, index, self.reso_plane ** 2,
                                  tn=self.scatter_tn,
                                  r_tile=self.scatter_r_tile)
        return fea.reshape(p.shape[0], self.c_dim,
                           self.reso_plane, self.reso_plane)

    def generate_grid_features(self, p, c):
        index = _grid_index(p, self.reso_grid, self.padding)
        fea = scatter_mean_pallas(c, index, self.reso_grid ** 3,
                                  tn=self.scatter_tn,
                                  r_tile=self.scatter_r_tile)
        return fea.reshape(p.shape[0], self.c_dim, self.reso_grid,
                           self.reso_grid, self.reso_grid)

    def forward(self, x):
        b_sz, d1, d2, d3 = x.shape
        dims = (d1, d2, d3)
        p = _build_p(b_sz, d1, d2, d3)
        c = conv3d_relu_pallas(x, self.weight, self.bias, k=self._k)  # bf16

        fea = {}
        if "grid" in self.plane_type:
            pp, cp = _reorder_for_banding(p, c, dims, "grid")
            fea["grid"] = self.generate_grid_features(pp, cp)
        else:
            if "xz" in self.plane_type:
                pp, cp = _reorder_for_banding(p, c, dims, "xz")
                fea["xz"] = self.generate_plane_features(pp, cp, "xz")
            if "xy" in self.plane_type:
                pp, cp = _reorder_for_banding(p, c, dims, "xy")
                fea["xy"] = self.generate_plane_features(pp, cp, "xy")
            if "yz" in self.plane_type:
                pp, cp = _reorder_for_banding(p, c, dims, "yz")
                fea["yz"] = self.generate_plane_features(pp, cp, "yz")
        return fea


# ----------------------------------------------------------------------------
# Pure-JAX reference (correctness check of the plane paths)
# ----------------------------------------------------------------------------
def _im2col_ref(x, k):
    b_sz, d1, d2, d3 = x.shape
    pad = 1 if k == 3 else 0
    xp = jnp.pad(x, ((0, 0), (pad, pad), (pad, pad), (pad, pad)))
    pats = [xp[:, a:a + d1, b:b + d2, c:c + d3]
            for a in range(k) for b in range(k) for c in range(k)]
    return jnp.stack(pats, axis=-1).reshape(b_sz, d1 * d2 * d3, k ** 3)


def _reference_plane(x, enc, plane):
    b_sz, d1, d2, d3 = x.shape
    n = d1 * d2 * d3
    patches = _im2col_ref(x.astype(jnp.float32), enc._k)
    w2 = enc.weight.reshape(enc.c_dim, -1).T
    c = jnp.einsum("bnk,kc->bnc", patches, w2,
                   precision=lax.Precision.HIGHEST)
    c = jnp.maximum(c + enc.bias[None, None, :], 0.0)
    p = _build_p(b_sz, d1, d2, d3)
    index = _plane_index(p, plane, enc.reso_plane, enc.padding)
    r2 = enc.reso_plane ** 2
    outs = []
    for b in range(b_sz):
        sums = jax.ops.segment_sum(c[b], index[b], num_segments=r2)
        cnt = jax.ops.segment_sum(jnp.ones((n,), jnp.float32), index[b],
                                  num_segments=r2)
        outs.append((sums / jnp.maximum(cnt, 1.0)[:, None]).T)
    return jnp.stack(outs).reshape(b_sz, enc.c_dim, enc.reso_plane,
                                   enc.reso_plane)


if __name__ == "__main__":
    B, D1, D2, D3 = 2, 8, 8, 12         # small, non-cubic voxel grid
    c_dim, reso = 32, 16                # small latent dim / plane resolution

    key = jax.random.PRNGKey(0)
    kx, kparam = jax.random.split(key)
    x = jax.random.normal(kx, (B, D1, D2, D3), dtype=jnp.float32)

    # Small scatter tiles so the R-tiling, data-dependent chunk window,
    # overlap skipping and multi-step accumulation paths are all exercised
    # at this toy size.
    enc = LocalVoxelEncoderPallas(c_dim=c_dim, plane_resolution=reso,
                                  plane_type=["xz", "xy", "yz"],
                                  kernel_size=3, padding=0.1, key=kparam,
                                  scatter_tn=128, scatter_r_tile=128)

    fea = enc.forward(x)
    for plane in ("xz", "xy", "yz"):
        out = jax.block_until_ready(fea[plane])
        assert out.shape == (B, c_dim, reso, reso), (plane, out.shape)
        ref = jax.block_until_ready(_reference_plane(x, enc, plane))
        # bf16 conv activations/weights, bf16 one-hot matmul and the approx
        # EUP reciprocal are intentional precision trades; the tolerance
        # reflects that (cell counts remain exact).
        np.testing.assert_allclose(np.asarray(out), np.asarray(ref),
                                   rtol=2e-2, atol=2e-2)
    print("KERNEL_OK")
</pallas_src>

<mosaic_0001>
module attributes {stable_mosaic.version = 11 : i64} {
  func.func @_conv_band_kernel(%arg0: i32, %arg1: i32, %arg2: memref<1x10x10x14xf32, #tpu.memory_space<vmem>>, %arg3: memref<9x14x384xbf16, #tpu.memory_space<vmem>>, %arg4: memref<1x384xf32, #tpu.memory_space<vmem>>, %arg5: memref<1x32x384xbf16, #tpu.memory_space<vmem>>) attributes {dimension_semantics = [#tpu.dimension_semantics<parallel>, #tpu.dimension_semantics<parallel>], iteration_bounds = array<i64: 2, 2>, scalar_prefetch = 0 : i64, scratch_operands = 0 : i64, tpu.core_type = #tpu.core_type<tc>, window_params = [{transform_indices = @transform_0, window_bounds = array<i64: 1, 10, 10, 14>}, {pipeline_mode = #tpu.pipeline_mode<synchronous>, transform_indices = @transform_1, window_bounds = array<i64: 9, 14, 384>}, {pipeline_mode = #tpu.pipeline_mode<synchronous>, transform_indices = @transform_2, window_bounds = array<i64: 1, 384>}, {transform_indices = @transform_3, window_bounds = array<i64: 1, 32, 384>}]} {
    %c4_i32 = arith.constant 4 : i32
    %0 = arith.muli %arg1, %c4_i32 : i32
    %1 = tpu.assume_multiple %0, 4 : i32
    %c0_i32 = arith.constant 0 : i32
    %2 = arith.addi %1, %c0_i32 : i32
    %c0 = arith.constant 0 : index
    %3 = arith.index_cast %2 : i32 to index
    %c0_0 = arith.constant 0 : index
    %c0_1 = arith.constant 0 : index
    %4 = vector.load %arg2[%c0, %3, %c0_0, %c0_1] : memref<1x10x10x14xf32, #tpu.memory_space<vmem>>, vector<1x4x8x14xf32>
    %5 = vector.shape_cast %4 : vector<1x4x8x14xf32> to vector<4x8x14xf32>
    %6 = vector.shape_cast %5 : vector<4x8x14xf32> to vector<32x14xf32>
    %7 = arith.truncf %6 : vector<32x14xf32> to vector<32x14xbf16>
    %c0_2 = arith.constant 0 : index
    %c0_3 = arith.constant 0 : index
    %c0_4 = arith.constant 0 : index
    %8 = vector.load %arg3[%c0_2, %c0_3, %c0_4] : memref<9x14x384xbf16, #tpu.memory_space<vmem>>, vector<1x14x384xbf16>
    %9 = vector.shape_cast %8 : vector<1x14x384xbf16> to vector<14x384xbf16>
    %cst = arith.constant dense<0.000000e+00> : vector<32x384xf32>
    %10 = tpu.matmul %7, %9, %cst {dimension_numbers = #tpu.dot_dimension_numbers<[1], [0], [0], [1], [0, 0, 1, 1], [], []>} : vector<32x14xbf16>, vector<14x384xbf16>, vector<32x384xf32> -> vector<32x384xf32>
    %c0_i32_5 = arith.constant 0 : i32
    %11 = arith.addi %1, %c0_i32_5 : i32
    %c0_6 = arith.constant 0 : index
    %12 = arith.index_cast %11 : i32 to index
    %c1 = arith.constant 1 : index
    %c0_7 = arith.constant 0 : index
    %13 = vector.load %arg2[%c0_6, %12, %c1, %c0_7] : memref<1x10x10x14xf32, #tpu.memory_space<vmem>>, vector<1x4x8x14xf32>
    %14 = vector.shape_cast %13 : vector<1x4x8x14xf32> to vector<4x8x14xf32>
    %15 = vector.shape_cast %14 : vector<4x8x14xf32> to vector<32x14xf32>
    %16 = arith.truncf %15 : vector<32x14xf32> to vector<32x14xbf16>
    %c1_8 = arith.constant 1 : index
    %c0_9 = arith.constant 0 : index
    %c0_10 = arith.constant 0 : index
    %17 = vector.load %arg3[%c1_8, %c0_9, %c0_10] : memref<9x14x384xbf16, #tpu.memory_space<vmem>>, vector<1x14x384xbf16>
    %18 = vector.shape_cast %17 : vector<1x14x384xbf16> to vector<14x384xbf16>
    %cst_11 = arith.constant dense<0.000000e+00> : vector<32x384xf32>
    %19 = tpu.matmul %16, %18, %cst_11 {dimension_numbers = #tpu.dot_dimension_numbers<[1], [0], [0], [1], [0, 0, 1, 1], [], []>} : vector<32x14xbf16>, vector<14x384xbf16>, vector<32x384xf32> -> vector<32x384xf32>
    %20 = arith.addf %10, %19 : vector<32x384xf32>
    %c0_i32_12 = arith.constant 0 : i32
    %21 = arith.addi %1, %c0_i32_12 : i32
    %c0_13 = arith.constant 0 : index
    %22 = arith.index_cast %21 : i32 to index
    %c2 = arith.constant 2 : index
    %c0_14 = arith.constant 0 : index
    %23 = vector.load %arg2[%c0_13, %22, %c2, %c0_14] : memref<1x10x10x14xf32, #tpu.memory_space<vmem>>, vector<1x4x8x14xf32>
    %24 = vector.shape_cast %23 : vector<1x4x8x14xf32> to vector<4x8x14xf32>
    %25 = vector.shape_cast %24 : vector<4x8x14xf32> to vector<32x14xf32>
    %26 = arith.truncf %25 : vector<32x14xf32> to vector<32x14xbf16>
    %c2_15 = arith.constant 2 : index
    %c0_16 = arith.constant 0 : index
    %c0_17 = arith.constant 0 : index
    %27 = vector.load %arg3[%c2_15, %c0_16, %c0_17] : memref<9x14x384xbf16, #tpu.memory_space<vmem>>, vector<1x14x384xbf16>
    %28 = vector.shape_cast %27 : vector<1x14x384xbf16> to vector<14x384xbf16>
    %cst_18 = arith.constant dense<0.000000e+00> : vector<32x384xf32>
    %29 = tpu.matmul %26, %28, %cst_18 {dimension_numbers = #tpu.dot_dimension_numbers<[1], [0], [0], [1], [0, 0, 1, 1], [], []>} : vector<32x14xbf16>, vector<14x384xbf16>, vector<32x384xf32> -> vector<32x384xf32>
    %30 = arith.addf %20, %29 : vector<32x384xf32>
    %c1_i32 = arith.constant 1 : i32
    %31 = arith.addi %1, %c1_i32 : i32
    %c0_19 = arith.constant 0 : index
    %32 = arith.index_cast %31 : i32 to index
    %c0_20 = arith.constant 0 : index
    %c0_21 = arith.constant 0 : index
    %33 = vector.load %arg2[%c0_19, %32, %c0_20, %c0_21] : memref<1x10x10x14xf32, #tpu.memory_space<vmem>>, vector<1x4x8x14xf32>
    %34 = vector.shape_cast %33 : vector<1x4x8x14xf32> to vector<4x8x14xf32>
    %35 = vector.shape_cast %34 : vector<4x8x14xf32> to vector<32x14xf32>
    %36 = arith.truncf %35 : vector<32x14xf32> to vector<32x14xbf16>
    %c3 = arith.constant 3 : index
    %c0_22 = arith.constant 0 : index
    %c0_23 = arith.constant 0 : index
    %37 = vector.load %arg3[%c3, %c0_22, %c0_23] : memref<9x14x384xbf16, #tpu.memory_space<vmem>>, vector<1x14x384xbf16>
    %38 = vector.shape_cast %37 : vector<1x14x384xbf16> to vector<14x384xbf16>
    %cst_24 = arith.constant dense<0.000000e+00> : vector<32x384xf32>
    %39 = tpu.matmul %36, %38, %cst_24 {dimension_numbers = #tpu.dot_dimension_numbers<[1], [0], [0], [1], [0, 0, 1, 1], [], []>} : vector<32x14xbf16>, vector<14x384xbf16>, vector<32x384xf32> -> vector<32x384xf32>
    %40 = arith.addf %30, %39 : vector<32x384xf32>
    %c1_i32_25 = arith.constant 1 : i32
    %41 = arith.addi %1, %c1_i32_25 : i32
    %c0_26 = arith.constant 0 : index
    %42 = arith.index_cast %41 : i32 to index
    %c1_27 = arith.constant 1 : index
    %c0_28 = arith.constant 0 : index
    %43 = vector.load %arg2[%c0_26, %42, %c1_27, %c0_28] : memref<1x10x10x14xf32, #tpu.memory_space<vmem>>, vector<1x4x8x14xf32>
    %44 = vector.shape_cast %43 : vector<1x4x8x14xf32> to vector<4x8x14xf32>
    %45 = vector.shape_cast %44 : vector<4x8x14xf32> to vector<32x14xf32>
    %46 = arith.truncf %45 : vector<32x14xf32> to vector<32x14xbf16>
    %c4 = arith.constant 4 : index
    %c0_29 = arith.constant 0 : index
    %c0_30 = arith.constant 0 : index
    %47 = vector.load %arg3[%c4, %c0_29, %c0_30] : memref<9x14x384xbf16, #tpu.memory_space<vmem>>, vector<1x14x384xbf16>
    %48 = vector.shape_cast %47 : vector<1x14x384xbf16> to vector<14x384xbf16>
    %cst_31 = arith.constant dense<0.000000e+00> : vector<32x384xf32>
    %49 = tpu.matmul %46, %48, %cst_31 {dimension_numbers = #tpu.dot_dimension_numbers<[1], [0], [0], [1], [0, 0, 1, 1], [], []>} : vector<32x14xbf16>, vector<14x384xbf16>, vector<32x384xf32> -> vector<32x384xf32>
    %50 = arith.addf %40, %49 : vector<32x384xf32>
    %c1_i32_32 = arith.constant 1 : i32
    %51 = arith.addi %1, %c1_i32_32 : i32
    %c0_33 = arith.constant 0 : index
    %52 = arith.index_cast %51 : i32 to index
    %c2_34 = arith.constant 2 : index
    %c0_35 = arith.constant 0 : index
    %53 = vector.load %arg2[%c0_33, %52, %c2_34, %c0_35] : memref<1x10x10x14xf32, #tpu.memory_space<vmem>>, vector<1x4x8x14xf32>
    %54 = vector.shape_cast %53 : vector<1x4x8x14xf32> to vector<4x8x14xf32>
    %55 = vector.shape_cast %54 : vector<4x8x14xf32> to vector<32x14xf32>
    %56 = arith.truncf %55 : vector<32x14xf32> to vector<32x14xbf16>
    %c5 = arith.constant 5 : index
    %c0_36 = arith.constant 0 : index
    %c0_37 = arith.constant 0 : index
    %57 = vector.load %arg3[%c5, %c0_36, %c0_37] : memref<9x14x384xbf16, #tpu.memory_space<vmem>>, vector<1x14x384xbf16>
    %58 = vector.shape_cast %57 : vector<1x14x384xbf16> to vector<14x384xbf16>
    %cst_38 = arith.constant dense<0.000000e+00> : vector<32x384xf32>
    %59 = tpu.matmul %56, %58, %cst_38 {dimension_numbers = #tpu.dot_dimension_numbers<[1], [0], [0], [1], [0, 0, 1, 1], [], []>} : vector<32x14xbf16>, vector<14x384xbf16>, vector<32x384xf32> -> vector<32x384xf32>
    %60 = arith.addf %50, %59 : vector<32x384xf32>
    %c2_i32 = arith.constant 2 : i32
    %61 = arith.addi %1, %c2_i32 : i32
    %c0_39 = arith.constant 0 : index
    %62 = arith.index_cast %61 : i32 to index
    %c0_40 = arith.constant 0 : index
    %c0_41 = arith.constant 0 : index
    %63 = vector.load %arg2[%c0_39, %62, %c0_40, %c0_41] : memref<1x10x10x14xf32, #tpu.memory_space<vmem>>, vector<1x4x8x14xf32>
    %64 = vector.shape_cast %63 : vector<1x4x8x14xf32> to vector<4x8x14xf32>
    %65 = vector.shape_cast %64 : vector<4x8x14xf32> to vector<32x14xf32>
    %66 = arith.truncf %65 : vector<32x14xf32> to vector<32x14xbf16>
    %c6 = arith.constant 6 : index
    %c0_42 = arith.constant 0 : index
    %c0_43 = arith.constant 0 : index
    %67 = vector.load %arg3[%c6, %c0_42, %c0_43] : memref<9x14x384xbf16, #tpu.memory_space<vmem>>, vector<1x14x384xbf16>
    %68 = vector.shape_cast %67 : vector<1x14x384xbf16> to vector<14x384xbf16>
    %cst_44 = arith.constant dense<0.000000e+00> : vector<32x384xf32>
    %69 = tpu.matmul %66, %68, %cst_44 {dimension_numbers = #tpu.dot_dimension_numbers<[1], [0], [0], [1], [0, 0, 1, 1], [], []>} : vector<32x14xbf16>, vector<14x384xbf16>, vector<32x384xf32> -> vector<32x384xf32>
    %70 = arith.addf %60, %69 : vector<32x384xf32>
    %c2_i32_45 = arith.constant 2 : i32
    %71 = arith.addi %1, %c2_i32_45 : i32
    %c0_46 = arith.constant 0 : index
    %72 = arith.index_cast %71 : i32 to index
    %c1_47 = arith.constant 1 : index
    %c0_48 = arith.constant 0 : index
    %73 = vector.load %arg2[%c0_46, %72, %c1_47, %c0_48] : memref<1x10x10x14xf32, #tpu.memory_space<vmem>>, vector<1x4x8x14xf32>
    %74 = vector.shape_cast %73 : vector<1x4x8x14xf32> to vector<4x8x14xf32>
    %75 = vector.shape_cast %74 : vector<4x8x14xf32> to vector<32x14xf32>
    %76 = arith.truncf %75 : vector<32x14xf32> to vector<32x14xbf16>
    %c7 = arith.constant 7 : index
    %c0_49 = arith.constant 0 : index
    %c0_50 = arith.constant 0 : index
    %77 = vector.load %arg3[%c7, %c0_49, %c0_50] : memref<9x14x384xbf16, #tpu.memory_space<vmem>>, vector<1x14x384xbf16>
    %78 = vector.shape_cast %77 : vector<1x14x384xbf16> to vector<14x384xbf16>
    %cst_51 = arith.constant dense<0.000000e+00> : vector<32x384xf32>
    %79 = tpu.matmul %76, %78, %cst_51 {dimension_numbers = #tpu.dot_dimension_numbers<[1], [0], [0], [1], [0, 0, 1, 1], [], []>} : vector<32x14xbf16>, vector<14x384xbf16>, vector<32x384xf32> -> vector<32x384xf32>
    %80 = arith.addf %70, %79 : vector<32x384xf32>
    %c2_i32_52 = arith.constant 2 : i32
    %81 = arith.addi %1, %c2_i32_52 : i32
    %c0_53 = arith.constant 0 : index
    %82 = arith.index_cast %81 : i32 to index
    %c2_54 = arith.constant 2 : index
    %c0_55 = arith.constant 0 : index
    %83 = vector.load %arg2[%c0_53, %82, %c2_54, %c0_55] : memref<1x10x10x14xf32, #tpu.memory_space<vmem>>, vector<1x4x8x14xf32>
    %84 = vector.shape_cast %83 : vector<1x4x8x14xf32> to vector<4x8x14xf32>
    %85 = vector.shape_cast %84 : vector<4x8x14xf32> to vector<32x14xf32>
    %86 = arith.truncf %85 : vector<32x14xf32> to vector<32x14xbf16>
    %c8 = arith.constant 8 : index
    %c0_56 = arith.constant 0 : index
    %c0_57 = arith.constant 0 : index
    %87 = vector.load %arg3[%c8, %c0_56, %c0_57] : memref<9x14x384xbf16, #tpu.memory_space<vmem>>, vector<1x14x384xbf16>
    %88 = vector.shape_cast %87 : vector<1x14x384xbf16> to vector<14x384xbf16>
    %cst_58 = arith.constant dense<0.000000e+00> : vector<32x384xf32>
    %89 = tpu.matmul %86, %88, %cst_58 {dimension_numbers = #tpu.dot_dimension_numbers<[1], [0], [0], [1], [0, 0, 1, 1], [], []>} : vector<32x14xbf16>, vector<14x384xbf16>, vector<32x384xf32> -> vector<32x384xf32>
    %90 = arith.addf %80, %89 : vector<32x384xf32>
    %c0_59 = arith.constant 0 : index
    %c0_60 = arith.constant 0 : index
    %91 = vector.load %arg4[%c0_59, %c0_60] : memref<1x384xf32, #tpu.memory_space<vmem>>, vector<1x384xf32>
    %92 = vector.broadcast %91 : vector<1x384xf32> to vector<32x384xf32>
    %93 = arith.addf %90, %92 : vector<32x384xf32>
    %cst_61 = arith.constant 0.000000e+00 : f32
    %94 = vector.broadcast %cst_61 : f32 to vector<32x384xf32>
    %95 = arith.maximumf %93, %94 : vector<32x384xf32>
    %96 = arith.truncf %95 : vector<32x384xf32> to vector<32x384xbf16>
    %c0_62 = arith.constant 0 : index
    %c0_63 = arith.constant 0 : index
    %c0_64 = arith.constant 0 : index
    %97 = vector.load %arg5[%c0_62, %c0_63, %c0_64] : memref<1x32x384xbf16, #tpu.memory_space<vmem>>, vector<1x32x384xbf16>
    %98 = vector.shape_cast %97 : vector<1x32x384xbf16> to vector<32x384xbf16>
    %99 = vector.shape_cast %96 : vector<32x384xbf16> to vector<1x32x384xbf16>
    tpu.vector_store %arg5[%c0_62, %c0_63, %c0_64], %99 {strides = array<i32>} : memref<1x32x384xbf16, #tpu.memory_space<vmem>>, vector<1x32x384xbf16>,
    return
  }
  func.func @transform_0(%arg0: i32, %arg1: i32) -> (i32, i32, i32, i32) {
    %c0_i32 = arith.constant 0 : i32
    %c0_i32_0 = arith.constant 0 : i32
    %c0_i32_1 = arith.constant 0 : i32
    %c0_i32_2 = arith.constant 0 : i32
    return %arg0, %c0_i32, %c0_i32_0, %c0_i32_1 : i32, i32, i32, i32
  }
  func.func @transform_1(%arg0: i32, %arg1: i32) -> (i32, i32, i32) {
    %c0_i32 = arith.constant 0 : i32
    %c0_i32_0 = arith.constant 0 : i32
    %c0_i32_1 = arith.constant 0 : i32
    %c0_i32_2 = arith.constant 0 : i32
    return %c0_i32, %c0_i32_0, %c0_i32_1 : i32, i32, i32
  }
  func.func @transform_2(%arg0: i32, %arg1: i32) -> (i32, i32) {
    %c0_i32 = arith.constant 0 : i32
    %c0_i32_0 = arith.constant 0 : i32
    %c0_i32_1 = arith.constant 0 : i32
    return %c0_i32, %c0_i32_0 : i32, i32
  }
  func.func @transform_3(%arg0: i32, %arg1: i32) -> (i32, i32, i32) {
    %c0_i32 = arith.constant 0 : i32
    %c0_i32_0 = arith.constant 0 : i32
    return %arg0, %arg1, %c0_i32 : i32, i32, i32
  }
}

</mosaic_0001>

<bundles_post_ra>
// kernel: tpu_custom_call.1
= control target key start
LH: loop header
LB: loop body
LE: loop exit
PB: predicated region body
PF: predicated region fallthrough
CT: control target
= control target key end

     0   :  { %8 = vsyncpa [#allocation3], 0  ;;  %s2297_s0 = inlined_call_operand.vmem [shape: f32[2,10,10,14], index: 0, kind: input, shape index: {}]   ;;  %s2298_s1 = inlined_call_operand.vmem [shape: bf16[9,14,384], index: 1, kind: input, shape index: {}]   ;;  %s2299_s2 = inlined_call_operand.vmem [shape: f32[1,384], index: 2, kind: input, shape index: {}]   ;;  %s2300_s3 = inlined_call_operand.hbm [shape: bf16[2,64,384], index: 3, kind: output, shape index: {}]  }
   0x1   :  { %10 = vsyncpa [#allocation3 + $0x1], 0  ;;  %s1757_s12 = smov 0   ;;  %s1759_s13 = smov 0  }
   0x2   :  { %s1761_s14 = smov 0   ;;  %s1763_s15 = smov 0  }
   0x3   :  { %s1765_s16 = smov 0   ;;  %s1767_s17 = smov 0  }
   0x4   :  { %s1769_s18 = smov 0   ;;  %s1771_s19 = smov 0  }
   0x5 LB: > { %s1296_s20 = sadd.s32 4294967295, %s1733_s19   ;;  %s1297_s21 = sadd.s32 4294967294, %s1733_s19   ;;  %s1733_s19 = sphi %s1771_s19, %s16_s19   ;;  %s1729_s18 = sphi %s1769_s18, %s2309_s18   ;;  %s1725_s17 = sphi %s1767_s17, %s2308_s17   ;;  %s1721_s16 = sphi %s1765_s16, %s2307_s16   ;;  %s1717_s15 = sphi %s1763_s15, %s2306_s15   ;;  %s1713_s14 = sphi %s1761_s14, %s2305_s14   ;;  %s1709_s13 = sphi %s1759_s13, %s2304_s13   ;;  %s1705_s12 = sphi %s1757_s12, %s2303_s12  }
   0x6   : > { %s25_s22 = sadd.s32 1, %s1725_s17  ;;  %s28_s23 = sadd.s32 1, %s1729_s18 }
   0x7   : > { %p26_p0 = scmp.ge.s32.totalorder %s25_s22, 2  ;;  %p115_p1 = scmp.ne.s32.totalorder %s1713_s14, %s1709_s13 }
   0x8   : > { %p116_p2 = scmp.eq.s32.totalorder %s1296_s20, 3  ;;  %p121_p5 = scmp.ne.s32.totalorder %s1709_s13, %s1705_s12 }
   0x9   : > { %s2311_s22 = smov (%p26_p0, %s25_s22), 0  ;;  %s2313_s23 = smov (!%p26_p0, %s28_s23), %s1729_s18 }
   0xa   : > { %s101_s24 = ssub.s32 %s1725_s17, %s2311_s22  ;;  %p1808_p3 = por %p116_p2, %p115_p1 }
   0xb   : > { %p30_p4 = scmp.ge.s32.totalorder %s2313_s23, 2  ;;  %p122_p6 = scmp.eq.s32.totalorder %s1297_s21, 3 }
   0xc   : > { %p1300_p7 = scmp.ge.s32.totalorder %s1733_s19, 1  ;;  %p154_p9 = scmp.lt.s32.totalorder %s1733_s19, 5 }
   0xd   : > { %s2315_s23 = smov (%p30_p4, %s2313_s23), 0  ;;  %p1817_p8 = por %p122_p6, %p121_p5 }
   0xe   : > { %s100_s27 = ssub.s32 %s1729_s18, %s2315_s23  ;;  %s105_s28 = sadd.s32 1, %s1713_s14 }
   0xf   : > { %s102_s29 = sor.u32 %s101_s24, %s100_s27  ;;  %p155_p10 = pnand %p1300_p7, %p154_p9 }
  0x10   : > { %p103_p11 = scmp.eq.s32.totalorder %s102_s29, 0  ;;  %p178_p12 = scmp.lt.s32.totalorder (!%p155_p10), %s1721_s16, 1 }
  0x11   : > { %158 = sbr.rel (%p155_p10) target bundleno = 394 (0x18a), region = 32  ;;  %s1531_s5 = sshll.u32 (!%p155_p10), %s1717_s15, 6 }
  0x12   : > { %s1826_s30 = scalar_select %p103_p11, %s1713_s14, %s105_s28  }
  0x13   : > { %s175_s27 = sand.u32 (!%p155_p10), 1, %s1709_s13   ;;  %s1564_s4 = smul.u32 (!%p155_p10), 12, %s1717_s15 }
  0x14   : > { %s1565_s6 = smul.u32 (!%p155_p10), 24, %s1721_s16  ;;  %s1192_s20 = scalar_lea.sflag (!%p155_p10), [#allocation3], %s175_s27 }
  0x16   : > { %v1310_v0 = vld [vmem:[%s2298_s1 + $0x18] sm:$0xf]  ;;  %v1536_v1 = vld [vmem:[%s2298_s1 + $0x20] sm:$0x70]  ;;  %vm229_vm0 = vcmask 1046528   ;;  %s179_s28 = scalar_select %p178_p12, %s1721_s16, 1 }
  0x17   : > { %v1311_v2 = vor.u32 %v1536_v1, %v1310_v0  ;;  %v1535_v3 = vld [vmem:[%s2298_s1 + $0x1c] sm:$0xf]  ;;  %v1312_v4 = vld [vmem:[%s2298_s1 + $0x24] sm:$0x70]  ;;  %v1318_v5 = vld [vmem:[%s2298_s1 + $0x20] sm:$0xf]  ;;  %s1204_s15 = sadd.s32 %s1565_s6, %s1564_s4 }
  0x18   : > { %v1315_v6 = vor.u32 %v1535_v3, %v1312_v4  ;;  %v1537_v7 = vld [vmem:[%s2298_s1 + $0x28] sm:$0x70]  ;;  %v1350_v8 = vld [vmem:[%s2298_s1 + $0x30] sm:$0xf]  ;;  %v1539_v11 = vld [vmem:[%s2298_s1 + $0x38] sm:$0x70] }
  0x19   : > { %v231_v9 = vsel %vm229_vm0, %v1311_v2, 0  ;;  %v1319_v10 = vor.u32 %v1537_v7, %v1318_v5  ;;  %v1336_v12 = vld [vmem:[%s2298_s1 + $0x8] sm:$0xf]  ;;  %s1563_s10 = smul.u32 160, %s179_s28  ;;  %v1351_v14 = vor.u32 %v1539_v11, %v1350_v8  ;;  %v1534_v15 = vld [vmem:[%s2298_s1 + $0x10] sm:$0x70] }
  0x1a   : > { %246 = vmatpush.bf16.msra.mxu0 %v231_v9  ;;  %1561 = vmatpush.bf16.msra.mxu3 %v231_v9  ;;  %v234_v13 = vsel %vm229_vm0, %v1315_v6, 0  ;;  %v1328_v16 = vld [vmem:[%s2298_s1] sm:$0xf]  ;;  %v1337_v18 = vor.u32 %v1534_v15, %v1336_v12  ;;  %v1533_v19 = vld [vmem:[%s2298_s1 + $0x8] sm:$0x70]  ;;  %vm222_vm1 = vcmask 113664  }
  0x1b   : > { %265 = vmatpush.bf16.msra.mxu1 %v234_v13  ;;  %v237_v17 = vsel %vm229_vm0, %v1319_v10, 0  ;;  %v1532_v20 = vld [vmem:[%s2298_s1 + $0x4] sm:$0xf]  ;;  %s182_s8 = scalar_lea.vmem %s2297_s0, %s1563_s10  ;;  %v412_v21 = vsel %vm229_vm0, %v1351_v14, 0  ;;  %v1329_v22 = vor.u32 %v1533_v19, %v1328_v16  ;;  %v1330_v23 = vld [vmem:[%s2298_s1 + $0xc] sm:$0x70] }
  0x1c   : > { %284 = vmatpush.bf16.msra.mxu2 %v237_v17  ;;  %v1538_v24 = vld [vmem:[%s2298_s1 + $0x34] sm:$0xf]  ;;  %s1883_s24 = scalar_lea.vmem %s182_s8, %s1531_s5  ;;  %v322_v25 = vsel %vm229_vm0, %v1337_v18, 0  ;;  %v1333_v26 = vor.u32 %v1532_v20, %v1330_v23  ;;  %v1352_v27 = vld [vmem:[%s2298_s1 + $0x3c] sm:$0x70]  ;;  %s1562_s5 = smul.u32 48, %s175_s27 }
  0x1d   : > { %v198_v28 = vld [vmem:[%s1883_s24 + $0x1] sm:$0xff]  ;;  %v1891_v29 = vld [vmem:[%s1883_s24 + $0x11] sm:$0xff]  ;;  %v316_v31 = vsel %vm229_vm0, %v1329_v22, 0  ;;  %v1355_v32 = vor.u32 %v1538_v24, %v1352_v27  ;;  %v1542_v38 = vld [vmem:[%s2298_s1 + $0x4c] sm:$0xf]  ;;  %s1528_s16 = sshll.u32 %s1204_s15, 2 }
  0x1e   : > { %v1894_v30 = vld [vmem:[%s1883_s24 + $0x21] sm:$0xff]  ;;  %v202_v33 = vpack.c.bf16 %v1891_v29, %v198_v28  ;;  %v1899_v34 = vld [vmem:[%s1883_s24 + $0x31] sm:$0xff]  ;;  %331 = vmatpush.bf16.msrb.mxu3 %v316_v31  ;;  %v319_v35 = vsel %vm229_vm0, %v1333_v26, 0  ;;  %v1544_v54 = vld [vmem:[%s2298_s1 + $0x58] sm:$0x70]  ;;  %s2216_s29 = scalar_lea.vmem [#allocation2], %s1562_s5  ;;  %s1206_s8 = scalar_lea.hbm %s2300_s3, %s1528_s16 }
  0x1f   : > { %369 = vmatpush.bf16.msrb.mxu1 %v322_v25  ;;  %v1904_v36 = vpack.c.bf16 %v1899_v34, %v1894_v30  ;;  %350 = vmatpush.bf16.msrb.mxu0 %v319_v35  ;;  %v415_v37 = vsel %vm229_vm0, %v1355_v32, 0  ;;  %v1380_v39 = vld [vmem:[%s2298_s1 + $0x54] sm:$0x70]  ;;  %v1540_v42 = vld [vmem:[%s2298_s1 + $0x40] sm:$0x70]  ;;  %v189_v51 = vld [vmem:[%s1883_s24 + $0x10] sm:$0xff]  ;;  %v604_v14 = vpack.c.bf16 %v1894_v30, %v1891_v29 }
  0x20   : > { %427 = vmatpush.bf16.msrb.mxu2 %v412_v21  ;;  %1320 = vmatmul.msk.bf16.vlgmr.msra.gmra.mxu0 %vm222_vm1, %v202_v33  ;;  %v1358_v40 = vld [vmem:[%s2298_s1 + $0x38] sm:$0xf]  ;;  %v1383_v41 = vor.u32 %v1542_v38, %v1380_v39  ;;  %v1378_v43 = vld [vmem:[%s2298_s1 + $0x48] sm:$0xf]  ;;  %v1543_v44 = vld [vmem:[%s2298_s1 + $0x50] sm:$0x70] }
  0x21   : > { %1322 = vmatmul.msk.bf16.vlgmr.msra.gmra.mxu1 %vm222_vm1, %v202_v33  ;;  %1321 = vmatmul.msk.bf16.vlgmr.msra.gmra.mxu3 %vm222_vm1, %v1904_v36  ;;  %v1359_v45 = vor.u32 %v1540_v42, %v1358_v40  ;;  %v1379_v46 = vor.u32 %v1543_v44, %v1378_v43  ;;  %v188_v50 = vld [vmem:[%s1883_s24] sm:$0xff]  ;;  %v1386_v53 = vld [vmem:[%s2298_s1 + $0x50] sm:$0xf]  ;;  %v1412_v63 = vld [vmem:[%s2298_s1 + $0x68] sm:$0xf]  ;;  %s1207_s9 = sshll.u32 %s2216_s29, 4  ;;  %s1208_s9 = int_to_ptr.vmem [resolvable:$true] %s1207_s9 }
  0x22   : > { %1324 = vmatmul.msk.bf16.vlgmr.msra.gmra.mxu2 %vm222_vm1, %v202_v33  ;;  %446 = vmatpush.bf16.msra.mxu3 %v415_v37  ;;  %v526_v47 = vsel %vm229_vm0, %v1383_v41, 0  ;;  %v192_v52 = vpack.c.bf16 %v189_v51, %v188_v50  ;;  %v1387_v55 = vor.u32 %v1544_v54, %v1386_v53  ;;  %v190_v57 = vld [vmem:[%s1883_s24 + $0x20] sm:$0xff]  ;;  %v191_v58 = vld [vmem:[%s1883_s24 + $0x30] sm:$0xff]  ;;  %v1546_v3 = vld [vmem:[%s2298_s1 + $0x68] sm:$0x70]  ;;  %s1209_s11 = sshll.u32 %s1206_s8, 4  ;;  %s1210_s11 = int_to_ptr.hbm [resolvable:$true] %s1209_s11 }
  0x23   : > { %v418_v48 = vsel %vm229_vm0, %v1359_v45, 0  ;;  %v523_v49 = vsel %vm229_vm0, %v1379_v46, 0  ;;  %v381_v59 = vld [vmem:[%s1883_s24 + $0x2] sm:$0xff]  ;;  %v1952_v60 = vld [vmem:[%s1883_s24 + $0x12] sm:$0xff]  ;;  %v1954_v61 = vpack.c.bf16 %v191_v58, %v190_v57  ;;  %v496_v19 = vpack.c.bf16 %v190_v57, %v189_v51  ;;  %v1553_v21 = vld [vmem:[%s2298_s1 + $0x98] sm:$0x70] }
  0x24   : > { %557 = vmatpush.bf16.msra.mxu2 %v526_v47  ;;  %465 = vmatpush.bf16.msra.mxu0 %v418_v48  ;;  %v529_v56 = vsel %vm229_vm0, %v1387_v55, 0  ;;  %v385_v62 = vpack.c.bf16 %v1952_v60, %v381_v59  ;;  %v1547_v0 = vld [vmem:[%s2298_s1 + $0x70] sm:$0x70]  ;;  %v1404_v1 = vld [vmem:[%s2298_s1 + $0x60] sm:$0xf]  ;;  %s1653_s21 = sshra.s32 %s1210_s11, 4  ;;  %s1654_s21 = int_to_ptr.hbm [resolvable:$true] %s1653_s21 }
  0x25   : > { %538 = vmatpush.bf16.msra.mxu1 %v523_v49  ;;  %v1413_v2 = vor.u32 %v1547_v0, %v1412_v63  ;;  %v1545_v4 = vld [vmem:[%s2298_s1 + $0x64] sm:$0xf]  ;;  %v1406_v5 = vld [vmem:[%s2298_s1 + $0x6c] sm:$0x70]  ;;  %v1405_v6 = vor.u32 %v1546_v3, %v1404_v1  ;;  %v1430_v15 = vld [vmem:[%s2298_s1 + $0x78] sm:$0xf]  ;;  %p1660_p2 = scmp.lt.s32.totalorder %s1654_s21, %s2300_s3 }
  0x26   : > { %v1409_v7 = vor.u32 %v1545_v4, %v1406_v5  ;;  %v1985_v11 = vld [vmem:[%s1883_s24 + $0x22] sm:$0xff]  ;;  %v1988_v12 = vld [vmem:[%s1883_s24 + $0x32] sm:$0xff]  ;;  %v1548_v22 = vld [vmem:[%s2298_s1 + $0x7c] sm:$0xf]  ;;  %s1659_s4 = scalar_lea.hbm %s2300_s3, 192 }
  0x27   : > { %v637_v8 = vsel %vm229_vm0, %v1413_v2, 0  ;;  %v631_v9 = vsel %vm229_vm0, %v1405_v6, 0  ;;  %v1992_v13 = vpack.c.bf16 %v1988_v12, %v1985_v11  ;;  %v1549_v16 = vld [vmem:[%s2298_s1 + $0x80] sm:$0x70]  ;;  %v1458_v20 = vld [vmem:[%s2298_s1 + $0x90] sm:$0xf]  ;;  %v712_v53 = vpack.c.bf16 %v1985_v11, %v1952_v60 }
  0x28   : > { %v634_v10 = vsel %vm229_vm0, %v1409_v7, 0  ;;  %v1431_v17 = vor.u32 %v1549_v16, %v1430_v15  ;;  %v1459_v23 = vor.u32 %v1553_v21, %v1458_v20  ;;  %v1432_v24 = vld [vmem:[%s2298_s1 + $0x84] sm:$0x70]  ;;  %v1438_v25 = vld [vmem:[%s2298_s1 + $0x80] sm:$0xf]  ;;  %v1451_v15 = vld [vmem:[%s1883_s24 + $0x50] sm:$0xff] }
  0x29   : > { %v1550_v26 = vld [vmem:[%s2298_s1 + $0x88] sm:$0x70]  ;;  %v1435_v27 = vor.u32 %v1548_v22, %v1432_v24  ;;  %v2037_v32 = vld [vmem:[%s1883_s24 + $0x40] sm:$0xff]  ;;  %v1552_v38 = vld [vmem:[%s2298_s1 + $0x94] sm:$0xf] }
  0x2a   : > { %v739_v18 = vsel %vm229_vm0, %v1431_v17, 0  ;;  %v1439_v28 = vor.u32 %v1550_v26, %v1438_v25  ;;  %v850_v29 = vsel %vm229_vm0, %v1459_v23, 0  ;;  %v497_v33 = vpack.c.bf16 %v2037_v32, %v191_v58  ;;  %v2045_v35 = vld [vmem:[%s1883_s24 + $0x41] sm:$0xff]  ;;  %v1486_v42 = vld [vmem:[%s2298_s1 + $0xb4] sm:$0x70] }
  0x2b   : > { %v742_v30 = vsel %vm229_vm0, %v1435_v27, 0  ;;  %v605_v37 = vpack.c.bf16 %v2045_v35, %v1899_v34  ;;  %v1460_v39 = vld [vmem:[%s2298_s1 + $0x9c] sm:$0x70]  ;;  %v1555_v34 = vld [vmem:[%s2298_s1 + $0xac] sm:$0xf]  ;;  %v824_v21 = vpack.c.bf16 %v1451_v15, %v2037_v32 }
  0x2c   : > { %v745_v31 = vsel %vm229_vm0, %v1439_v28, 0  ;;  %v1463_v40 = vor.u32 %v1552_v38, %v1460_v39  ;;  %v1489_v43 = vor.u32 %v1555_v34, %v1486_v42  ;;  %v1466_v45 = vld [vmem:[%s2298_s1 + $0x98] sm:$0xf]  ;;  %v1554_v46 = vld [vmem:[%s2298_s1 + $0xa0] sm:$0x70] }
  0x2d   : > { %v1484_v47 = vld [vmem:[%s2298_s1 + $0xa8] sm:$0xf]  ;;  %v1467_v48 = vor.u32 %v1554_v46, %v1466_v45  ;;  %v1556_v49 = vld [vmem:[%s2298_s1 + $0xb0] sm:$0x70]  ;;  %v1492_v58 = vld [vmem:[%s2298_s1 + $0xb0] sm:$0xf] }
  0x2e   : > { %v853_v41 = vsel %vm229_vm0, %v1463_v40, 0  ;;  %v961_v44 = vsel %vm229_vm0, %v1489_v43, 0  ;;  %v1485_v50 = vor.u32 %v1556_v49, %v1484_v47  ;;  %v2088_v54 = vld [vmem:[%s1883_s24 + $0x42] sm:$0xff]  ;;  %v1557_v59 = vld [vmem:[%s2298_s1 + $0xb8] sm:$0x70]  ;;  %v1477_v45 = vld [vmem:[%s1883_s24 + $0x51] sm:$0xff] }
  0x2f   : > { %v856_v51 = vsel %vm229_vm0, %v1467_v48, 0  ;;  %v713_v55 = vpack.c.bf16 %v2088_v54, %v1988_v12  ;;  %v1493_v60 = vor.u32 %v1557_v59, %v1492_v58  ;;  %v1518_v63 = vld [vmem:[%s2298_s1 + $0xc8] sm:$0xf]  ;;  %v1560_v0 = vld [vmem:[%s2298_s1 + $0xd0] sm:$0x70]  ;;  %v932_v48 = vpack.c.bf16 %v1477_v45, %v2045_v35 }
  0x30   : > { %1340 = vmatmul.msk.bf16.vlgmr.msrb.gmra.mxu0 %vm222_vm1, %v192_v52  ;;  %v1519_v1 = vor.u32 %v1560_v0, %v1518_v63  ;;  %v1510_v7 = vld [vmem:[%s2298_s1 + $0xc0] sm:$0xf]  ;;  %v1512_v11 = vld [vmem:[%s2298_s1 + $0xcc] sm:$0x70] }
  0x31   : > { %1323 = vmatmul.msk.bf16.gmra.mxu1 %vm222_vm1, %v1904_v36  ;;  %1338 = vmatmul.msk.bf16.vlgmr.msrb.gmra.mxu3 %vm222_vm1, %v192_v52  ;;  %v1503_v0 = vld [vmem:[%s1883_s24 + $0x52] sm:$0xff]  ;;  %s1655_s24 = scalar_lea.hbm %s1654_s21, 48 }
  0x32   : > { %1325 = vmatmul.msk.bf16.gmra.mxu2 %vm222_vm1, %v1904_v36  ;;  %576 = vmatpush.bf16.msrb.mxu3 %v529_v56  ;;  %v1072_v4 = vsel %vm229_vm0, %v1519_v1, 0  ;;  %p1656_p13 = scmp.ne.s32.totalorder %s1654_s21, %s1655_s24  ;;  %p1661_p4 = scmp.lt.s32.totalorder %s1659_s4, %s1655_s24 }
  0x33   : > { %646 = vmatpush.bf16.msrb.mxu0 %v631_v9  ;;  %v1558_v9 = vld [vmem:[%s2298_s1 + $0xc4] sm:$0xf] }
  0x34   : > { %v1515_v12 = vor.u32 %v1558_v9, %v1512_v11  ;;  %p1657_p0 = pnand %p1656_p13, %p1808_p3  ;;  %p1662_p5 = por %p1661_p4, %p1660_p2 }
  0x36   : > { %v1069_v16 = vsel %vm229_vm0, %v1515_v12, 0  ;;  %p1658_p1 = pneg %p1657_p0 }
  0x38   : > { %p1663_p6 = pnand %p1662_p5, %p1658_p1 }
  0x40   : > { %1341 = vmatmul.msk.bf16.gmra.mxu0 %vm222_vm1, %v1954_v61 }
  0x41   : > { %1342 = vmatmul.msk.bf16.vlgmr.msrb.gmra.mxu1 %vm222_vm1, %v192_v52  ;;  %1339 = vmatmul.msk.bf16.gmra.mxu3 %vm222_vm1, %v1954_v61  ;;  %v958_v52 = vsel %vm229_vm0, %v1485_v50, 0 }
  0x42   : > { %1360 = vmatmul.msk.bf16.vlgmr.msrb.gmra.mxu2 %vm222_vm1, %v385_v62  ;;  %665 = vmatpush.bf16.msrb.mxu1 %v634_v10 }
  0x43   : > { %684 = vmatpush.bf16.msrb.mxu2 %v637_v8  ;;  %v1559_v8 = vld [vmem:[%s2298_s1 + $0xc8] sm:$0x70] }
  0x44   : > { %v1511_v10 = vor.u32 %v1559_v8, %v1510_v7 }
  0x50   : > { %1364 = vmatmul.msk.bf16.vlgmr.msra.gmra.mxu0 %vm222_vm1, %v385_v62 }
  0x51   : > { %1343 = vmatmul.msk.bf16.gmra.mxu1 %vm222_vm1, %v1954_v61  ;;  %1362 = vmatmul.msk.bf16.vlgmr.msra.gmra.mxu3 %vm222_vm1, %v385_v62  ;;  %v964_v62 = vsel %vm229_vm0, %v1493_v60, 0 }
  0x52   : > { %1361 = vmatmul.msk.bf16.gmra.mxu2 %vm222_vm1, %v1992_v13  ;;  %754 = vmatpush.bf16.msra.mxu3 %v739_v18 }
  0x53   : > { %773 = vmatpush.bf16.msra.mxu0 %v742_v30 }
  0x60   : > { %1365 = vmatmul.msk.bf16.gmra.mxu0 %vm222_vm1, %v1992_v13 }
  0x61   : > { %1388 = vmatmul.msk.bf16.vlgmr.msra.gmra.mxu1 %vm222_vm1, %v496_v19  ;;  %1363 = vmatmul.msk.bf16.gmra.mxu3 %vm222_vm1, %v1992_v13 }
  0x62   : > { %1390 = vmatmul.msk.bf16.vlgmr.msra.gmra.mxu2 %vm222_vm1, %v496_v19  ;;  %792 = vmatpush.bf16.msra.mxu1 %v745_v31 }
  0x63   : > { %865 = vmatpush.bf16.msra.mxu2 %v850_v29 }
  0x70   : > { %1414 = vmatmul.msk.bf16.vlgmr.msrb.gmra.mxu0 %vm222_vm1, %v604_v14 }
  0x71   : > { %1389 = vmatmul.msk.bf16.gmra.mxu1 %vm222_vm1, %v497_v33  ;;  %1392 = vmatmul.msk.bf16.vlgmr.msrb.gmra.mxu3 %vm222_vm1, %v496_v19 }
  0x72   : > { %1391 = vmatmul.msk.bf16.gmra.mxu2 %vm222_vm1, %v497_v33  ;;  %884 = vmatpush.bf16.msrb.mxu3 %v853_v41 }
  0x73   : > { %903 = vmatpush.bf16.msrb.mxu0 %v856_v51 }
  0x80   : > { %1415 = vmatmul.msk.bf16.gmra.mxu0 %vm222_vm1, %v605_v37 }
  0x81   : > { %1416 = vmatmul.msk.bf16.vlgmr.msrb.gmra.mxu1 %vm222_vm1, %v604_v14  ;;  %1393 = vmatmul.msk.bf16.gmra.mxu3 %vm222_vm1, %v497_v33 }
  0x82   : > { %1418 = vmatmul.msk.bf16.vlgmr.msrb.gmra.mxu2 %vm222_vm1, %v604_v14  ;;  %973 = vmatpush.bf16.msrb.mxu1 %v958_v52  ;;  %v1066_v14 = vsel %vm229_vm0, %v1511_v10, 0 }
  0x83   : > { %992 = vmatpush.bf16.msrb.mxu2 %v961_v44 }
  0x90   : > { %1442 = vmatmul.msk.bf16.vlgmr.msra.gmra.mxu0 %vm222_vm1, %v712_v53 }
  0x91   : > { %1417 = vmatmul.msk.bf16.gmra.mxu1 %vm222_vm1, %v605_v37  ;;  %1440 = vmatmul.msk.bf16.vlgmr.msra.gmra.mxu3 %vm222_vm1, %v712_v53 }
  0x92   : > { %1419 = vmatmul.msk.bf16.gmra.mxu2 %vm222_vm1, %v605_v37  ;;  %1011 = vmatpush.bf16.msra.mxu3 %v964_v62 }
  0x93   : > { %1081 = vmatpush.bf16.msra.mxu0 %v1066_v14 }
  0x9d   : > { %v248_v56 = vpop.f32.mrf.mxu0 }
  0x9e   : > { %v267_v57 = vpop.f32.mrf.mxu1 }
  0xa0   : > { %1443 = vmatmul.msk.bf16.gmra.mxu0 %vm222_vm1, %v713_v55 }
  0xa1   : > { %1444 = vmatmul.msk.bf16.vlgmr.msra.gmra.mxu1 %vm222_vm1, %v712_v53  ;;  %1441 = vmatmul.msk.bf16.gmra.mxu3 %vm222_vm1, %v713_v55 }
  0xa2   : > { %1468 = vmatmul.msk.bf16.vlgmr.msra.gmra.mxu2 %vm222_vm1, %v1954_v61  ;;  %1100 = vmatpush.bf16.msra.mxu1 %v1069_v16 }
  0xa3   : > { %1119 = vmatpush.bf16.msra.mxu2 %v1072_v4 }
  0xa4   : > { %v253_v2 = vpop.f32.mrf.mxu3 }
  0xa5   : > { %v286_v3 = vpop.f32.mrf.mxu2  ;;  %v250_v5 = vpop.f32.mrf.mxu0 }
  0xa6   : > { %v269_v6 = vpop.f32.mrf.mxu1 }
  0xac   : > { %v255_v17 = vpop.f32.mrf.mxu3 }
  0xad   : > { %v288_v18 = vpop.f32.mrf.mxu2  ;;  %v352_v20 = vpop.f32.mrf.mxu0 }
  0xae   : > { %v272_v19 = vpop.f32.mrf.mxu1  ;;  %v353_v22 = vadd.f32 %v352_v20, %v267_v57 }
  0xb0   : > { %1472 = vmatmul.msk.bf16.vlgmr.msrb.gmra.mxu0 %vm222_vm1, %v1954_v61 }
  0xb1   : > { %1445 = vmatmul.msk.bf16.gmra.mxu1 %vm222_vm1, %v713_v55  ;;  %1470 = vmatmul.msk.bf16.vlgmr.msrb.gmra.mxu3 %vm222_vm1, %v1954_v61 }
  0xb2   : > { %1469 = vmatmul.msk.bf16.gmra.mxu2 %vm222_vm1, %v824_v21 }
  0xb4   : > { %v333_v24 = vpop.f32.mrf.mxu3 }
  0xb5   : > { %v291_v23 = vpop.f32.mrf.mxu2  ;;  %v334_v25 = vadd.f32 %v333_v24, %v248_v56  ;;  %v354_v27 = vpop.f32.mrf.mxu0 }
  0xb6   : > { %v274_v26 = vpop.f32.mrf.mxu1  ;;  %v355_v28 = vadd.f32 %v354_v27, %v269_v6 }
  0xbc   : > { %v335_v30 = vpop.f32.mrf.mxu3 }
  0xbd   : > { %v293_v29 = vpop.f32.mrf.mxu2  ;;  %v336_v31 = vadd.f32 %v335_v30, %v250_v5  ;;  %v357_v32 = vpop.f32.mrf.mxu0 }
  0xbe   : > { %v371_v33 = vpop.f32.mrf.mxu1  ;;  %v358_v37 = vadd.f32 %v357_v32, %v272_v19 }
  0xbf   : > { %v372_v38 = vadd.f32 %v371_v33, %v286_v3  ;;  %v1040_v3 = vpack.c.bf16 %v1503_v0, %v2088_v54 }
  0xc0   : > { %1473 = vmatmul.msk.bf16.gmra.mxu0 %vm222_vm1, %v824_v21 }
  0xc1   : > { %1494 = vmatmul.msk.bf16.vlgmr.msrb.gmra.mxu1 %vm222_vm1, %v1904_v36  ;;  %1471 = vmatmul.msk.bf16.gmra.mxu3 %vm222_vm1, %v824_v21 }
  0xc2   : > { %1496 = vmatmul.msk.bf16.vlgmr.msrb.gmra.mxu2 %vm222_vm1, %v1904_v36 }
  0xc4   : > { %v338_v61 = vpop.f32.mrf.mxu3 }
  0xc5   : > { %v429_v39 = vpop.f32.mrf.mxu2  ;;  %v339_v40 = vadd.f32 %v338_v61, %v253_v2  ;;  %v359_v34 = vpop.f32.mrf.mxu0 }
  0xc6   : > { %v477_v41 = vadd.f32 %v429_v39, %v334_v25  ;;  %v373_v42 = vpop.f32.mrf.mxu1  ;;  %v360_v43 = vadd.f32 %v359_v34, %v274_v26 }
  0xc7   : > { %v374_v44 = vadd.f32 %v373_v42, %v288_v18 }
  0xcc   : > { %v340_v46 = vpop.f32.mrf.mxu3 }
  0xcd   : > { %v431_v47 = vpop.f32.mrf.mxu2  ;;  %v341_v49 = vadd.f32 %v340_v46, %v255_v17  ;;  %v467_v52 = vpop.f32.mrf.mxu0 }
  0xce   : > { %v480_v50 = vadd.f32 %v431_v47, %v336_v31  ;;  %v376_v51 = vpop.f32.mrf.mxu1  ;;  %v479_v55 = vadd.f32 %v467_v52, %v372_v38 }
  0xcf   : > { %v377_v53 = vadd.f32 %v376_v51, %v291_v23 }
  0xd0   : > { %1520 = vmatmul.msk.bf16.vlgmr.msra.gmra.mxu0 %vm222_vm1, %v1992_v13 }
  0xd1   : > { %1495 = vmatmul.msk.bf16.gmra.mxu1 %vm222_vm1, %v932_v48  ;;  %1498 = vmatmul.msk.bf16.vlgmr.msra.gmra.mxu3 %vm222_vm1, %v1904_v36 }
  0xd2   : > { %1497 = vmatmul.msk.bf16.gmra.mxu2 %vm222_vm1, %v932_v48 }
  0xd4   : > { %v448_v57 = vpop.f32.mrf.mxu3 }
  0xd5   : > { %v434_v56 = vpop.f32.mrf.mxu2  ;;  %v478_v58 = vadd.f32 %v448_v57, %v353_v22  ;;  %v469_v60 = vpop.f32.mrf.mxu0 }
  0xd6   : > { %v483_v35 = vadd.f32 %v434_v56, %v339_v40  ;;  %v378_v59 = vpop.f32.mrf.mxu1  ;;  %v482_v63 = vadd.f32 %v469_v60, %v374_v44 }
  0xd7   : > { %v379_v62 = vadd.f32 %v378_v59, %v293_v29 }
  0xdc   : > { %v450_v2 = vpop.f32.mrf.mxu3 }
  0xdd   : > { %v436_v1 = vpop.f32.mrf.mxu2  ;;  %v481_v5 = vadd.f32 %v450_v2, %v355_v28  ;;  %v472_v6 = vpop.f32.mrf.mxu0 }
  0xde   : > { %v486_v4 = vadd.f32 %v436_v1, %v341_v49  ;;  %v540_v7 = vpop.f32.mrf.mxu1  ;;  %v485_v8 = vadd.f32 %v472_v6, %v377_v53 }
  0xdf   : > { %v588_v9 = vadd.f32 %v540_v7, %v477_v41 }
  0xe0   : > { %1521 = vmatmul.msk.bf16.gmra.mxu0 %vm222_vm1, %v1040_v3 }
  0xe1   : > { %1522 = vmatmul.msk.bf16.vlgmr.msra.gmra.mxu1 %vm222_vm1, %v1992_v13  ;;  %1499 = vmatmul.msk.bf16.gmra.mxu3 %vm222_vm1, %v932_v48 }
  0xe2   : > { %1524 = vmatmul.msk.bf16.vlgmr.msra.gmra.mxu2 %vm222_vm1, %v1992_v13 }
  0xe4   : > { %v453_v36 = vpop.f32.mrf.mxu3 }
  0xe5   : > { %v559_v10 = vpop.f32.mrf.mxu2  ;;  %v484_v11 = vadd.f32 %v453_v36, %v358_v37  ;;  %v474_v12 = vpop.f32.mrf.mxu0 }
  0xe6   : > { %v589_v54 = vadd.f32 %v559_v10, %v478_v58  ;;  %v542_v14 = vpop.f32.mrf.mxu1  ;;  %v488_v15 = vadd.f32 %v474_v12, %v379_v62 }
  0xe7   : > { %v591_v16 = vadd.f32 %v542_v14, %v480_v50 }
  0xec   : > { %v455_v17 = vpop.f32.mrf.mxu3 }
  0xed   : > { %v561_v18 = vpop.f32.mrf.mxu2  ;;  %v487_v19 = vadd.f32 %v455_v17, %v360_v43  ;;  %v648_v22 = vpop.f32.mrf.mxu0 }
  0xee   : > { %v592_v20 = vadd.f32 %v561_v18, %v481_v5  ;;  %v545_v21 = vpop.f32.mrf.mxu1  ;;  %v2155_v24 = vadd.f32 %v648_v22, %v588_v9 }
  0xef   : > { %v594_v23 = vadd.f32 %v545_v21, %v483_v35 }
  0xf1   : > { %1523 = vmatmul.msk.bf16.gmra.mxu1 %vm222_vm1, %v1040_v3 }
  0xf2   : > { %1525 = vmatmul.msk.bf16.gmra.mxu2 %vm222_vm1, %v1040_v3 }
  0xf4   : > { %v578_v25 = vpop.f32.mrf.mxu3 }
  0xf5   : > { %v564_v13 = vpop.f32.mrf.mxu2  ;;  %v590_v27 = vadd.f32 %v578_v25, %v479_v55  ;;  %v650_v29 = vpop.f32.mrf.mxu0 }
  0xf6   : > { %v595_v26 = vadd.f32 %v564_v13, %v484_v11  ;;  %v547_v28 = vpop.f32.mrf.mxu1  ;;  %v2159_v31 = vadd.f32 %v650_v29, %v591_v16 }
  0xf7   : > { %v597_v30 = vadd.f32 %v547_v28, %v486_v4 }
  0xfc   : > { %v580_v33 = vpop.f32.mrf.mxu3 }
  0xfd   : > { %v566_v32 = vpop.f32.mrf.mxu2  ;;  %v593_v38 = vadd.f32 %v580_v33, %v482_v63  ;;  %v653_v61 = vpop.f32.mrf.mxu0 }
  0xfe   : > { %v598_v37 = vadd.f32 %v566_v32, %v487_v19  ;;  %v667_v39 = vpop.f32.mrf.mxu1  ;;  %v2161_v40 = vadd.f32 %v653_v61, %v594_v23  ;;  %v1143_v61 = vld [vmem:[%s2299_s2] sm:$0x7] }
  0xff   : > { %v697_v41 = vadd.f32 %v667_v39, %v589_v54 }
 0x104   : > { %v583_v34 = vpop.f32.mrf.mxu3 }
 0x105   : > { %v686_v42 = vpop.f32.mrf.mxu2  ;;  %v596_v43 = vadd.f32 %v583_v34, %v485_v8  ;;  %v655_v45 = vpop.f32.mrf.mxu0 }
 0x106   : > { %v698_v44 = vadd.f32 %v686_v42, %v590_v27  ;;  %v669_v46 = vpop.f32.mrf.mxu1  ;;  %v2163_v47 = vadd.f32 %v655_v45, %v597_v30 }
 0x107   : > { %v2165_v48 = vadd.f32 %v669_v46, %v592_v20 }
 0x10c   : > { %v585_v49 = vpop.f32.mrf.mxu3 }
 0x10d   : > { %v688_v50 = vpop.f32.mrf.mxu2  ;;  %v599_v51 = vadd.f32 %v585_v49, %v488_v15  ;;  %v775_v55 = vpop.f32.mrf.mxu0 }
 0x10e   : > { %v701_v52 = vadd.f32 %v688_v50, %v593_v38  ;;  %v672_v53 = vpop.f32.mrf.mxu1  ;;  %v805_v39 = vadd.f32 %v775_v55, %v697_v41 }
 0x10f   : > { %v2167_v56 = vadd.f32 %v672_v53, %v595_v26 }
 0x114   : > { %v756_v35 = vpop.f32.mrf.mxu3 }
 0x115   : > { %v691_v57 = vpop.f32.mrf.mxu2  ;;  %v777_v60 = vpop.f32.mrf.mxu0  ;;  %v804_v32 = vadd.f32 %v756_v35, %v2155_v24 }
 0x116   : > { %v704_v58 = vadd.f32 %v691_v57, %v596_v43  ;;  %v674_v59 = vpop.f32.mrf.mxu1  ;;  %v808_v57 = vadd.f32 %v777_v60, %v2165_v48 }
 0x117   : > { %v2169_v62 = vadd.f32 %v674_v59, %v598_v37 }
 0x11c   : > { %v758_v0 = vpop.f32.mrf.mxu3 }
 0x11d   : > { %v693_v63 = vpop.f32.mrf.mxu2  ;;  %v2171_v2 = vpop.f32.mrf.mxu0  ;;  %v807_v49 = vadd.f32 %v758_v0, %v2159_v31 }
 0x11e   : > { %v707_v1 = vadd.f32 %v693_v63, %v599_v51  ;;  %v794_v3 = vpop.f32.mrf.mxu1  ;;  %v2205_v51 = vperm.slane %v1143_v61, 1 }
 0x11f   : > { %v806_v4 = vadd.f32 %v794_v3, %v698_v44  ;;  %v2199_v44 = vperm.slane %v1143_v61, 0 }
 0x124   : > { %v761_v5 = vpop.f32.mrf.mxu3 }
 0x125   : > { %v867_v6 = vpop.f32.mrf.mxu2  ;;  %v2173_v7 = vpop.f32.mrf.mxu0 }
 0x126   : > { %v796_v8 = vpop.f32.mrf.mxu1  ;;  %v915_v38 = vadd.f32 %v867_v6, %v804_v32  ;;  %v2212_v6 = vperm.slane %v1143_v61, 2 }
 0x127   : > { %v2175_v9 = vadd.f32 %v796_v8, %v701_v52  ;;  %v810_v8 = vadd.f32 %v761_v5, %v2161_v40  ;;  %v811_v40 = vadd.f32 %v2171_v2, %v2167_v56 }
 0x12c   : > { %v2177_v36 = vpop.f32.mrf.mxu3 }
 0x12d   : > { %v869_v10 = vpop.f32.mrf.mxu2  ;;  %v905_v54 = vpop.f32.mrf.mxu0 }
 0x12e   : > { %v799_v11 = vpop.f32.mrf.mxu1  ;;  %v918_v53 = vadd.f32 %v869_v10, %v807_v49  ;;  %v917_v59 = vadd.f32 %v905_v54, %v806_v4 }
 0x12f   : > { %v2179_v12 = vadd.f32 %v799_v11, %v704_v58 }
 0x134   : > { %v886_v15 = vpop.f32.mrf.mxu3 }
 0x135   : > { %v872_v14 = vpop.f32.mrf.mxu2  ;;  %v2181_v17 = vpop.f32.mrf.mxu0  ;;  %v916_v42 = vadd.f32 %v886_v15, %v805_v39 }
 0x136   : > { %v801_v16 = vpop.f32.mrf.mxu1  ;;  %v921_v60 = vadd.f32 %v872_v14, %v810_v8 }
 0x137   : > { %v2183_v18 = vadd.f32 %v801_v16, %v707_v1 }
 0x13c   : > { %v888_v20 = vpop.f32.mrf.mxu3 }
 0x13d   : > { %v2185_v19 = vpop.f32.mrf.mxu2  ;;  %v2187_v21 = vpop.f32.mrf.mxu0  ;;  %v919_v31 = vadd.f32 %v888_v20, %v808_v57 }
 0x13e   : > { %v975_v22 = vpop.f32.mrf.mxu1 }
 0x13f   : > { %v1023_v34 = vadd.f32 %v975_v22, %v915_v38 }
 0x144   : > { %v891_v25 = vpop.f32.mrf.mxu3 }
 0x145   : > { %v994_v23 = vpop.f32.mrf.mxu2  ;;  %v2189_v26 = vpop.f32.mrf.mxu0 }
 0x146   : > { %v977_v13 = vpop.f32.mrf.mxu1  ;;  %v1024_v24 = vadd.f32 %v994_v23, %v916_v42  ;;  %v813_v42 = vadd.f32 %v2177_v36, %v2163_v47  ;;  %v814_v47 = vadd.f32 %v2173_v7, %v2169_v62 }
 0x147   : > { %v1026_v35 = vadd.f32 %v977_v13, %v918_v53 }
 0x14c   : > { %v2191_v29 = vpop.f32.mrf.mxu3 }
 0x14d   : > { %v996_v27 = vpop.f32.mrf.mxu2  ;;  %v1083_v30 = vpop.f32.mrf.mxu0  ;;  %v925_v53 = vadd.f32 %v2191_v29, %v814_v47 }
 0x14e   : > { %v980_v28 = vpop.f32.mrf.mxu1  ;;  %v1131_v43 = vadd.f32 %v1083_v30, %v1023_v34  ;;  %v1027_v10 = vadd.f32 %v996_v27, %v919_v31  ;;  %v920_v27 = vadd.f32 %v2181_v17, %v2175_v9  ;;  %v922_v30 = vadd.f32 %v891_v25, %v811_v40 }
 0x14f   : > { %v1029_v5 = vadd.f32 %v980_v28, %v921_v60  ;;  %v924_v9 = vadd.f32 %v2185_v19, %v813_v42  ;;  %v923_v19 = vadd.f32 %v2187_v21, %v2179_v12 }
 0x150   : > { %v1151_v41 = vadd.f32 %v2199_v44, %v1131_v43 }
 0x152   : > { %v1163_v63 = vmax.f32 %v1151_v41, 0.0 }
 0x154   : > { %v1013_v45 = vpop.f32.mrf.mxu3 }
 0x155   : > { %v999_v33 = vpop.f32.mrf.mxu2  ;;  %v1085_v46 = vpop.f32.mrf.mxu0  ;;  %v1025_v3 = vadd.f32 %v1013_v45, %v917_v59 }
 0x156   : > { %v2194_v37 = vpop.f32.mrf.mxu1  ;;  %v1134_v0 = vadd.f32 %v1085_v46, %v1026_v35  ;;  %v1030_v43 = vadd.f32 %v999_v33, %v922_v30 }
 0x157   : > { %v1032_v36 = vadd.f32 %v2194_v37, %v924_v9 }
 0x158   : > { %v1154_v13 = vadd.f32 %v2199_v44, %v1134_v0 }
 0x15a   : > { %v1166_v32 = vmax.f32 %v1154_v13, 0.0 }
 0x15c   : > { %v1015_v11 = vpop.f32.mrf.mxu3 }
 0x15d   : > { %v2202_v50 = vpop.f32.mrf.mxu2  ;;  %v1088_v22 = vpop.f32.mrf.mxu0  ;;  %v1028_v39 = vadd.f32 %v1015_v11, %v920_v27 }
 0x15e   : > { %v1102_v52 = vpop.f32.mrf.mxu1  ;;  %v1137_v38 = vadd.f32 %v1088_v22, %v1029_v5  ;;  %v1033_v62 = vadd.f32 %v2202_v50, %v925_v53  ;;  %v926_v50 = vadd.f32 %v2189_v26, %v2183_v18 }
 0x15f   : > { %v1132_v55 = vadd.f32 %v1102_v52, %v1024_v24 }
 0x160   : > { %v1157_v17 = vadd.f32 %v2199_v44, %v1137_v38 }
 0x161   : > { %v1152_v58 = vadd.f32 %v2205_v51, %v1132_v55 }
 0x162   : > { %v1169_v41 = vmax.f32 %v1157_v17, 0.0 }
 0x163   : > { %v1164_v1 = vmax.f32 %v1152_v58, 0.0 }
 0x164   : > { %v1018_v25 = vpop.f32.mrf.mxu3 }
 0x165   : > { %v1175_v15 = vpack.c.bf16 %v1164_v1, %v1163_v63  ;;  %v1121_v16 = vpop.f32.mrf.mxu2  ;;  %v1090_v49 = vpop.f32.mrf.mxu0  ;;  %v1031_v35 = vadd.f32 %v1018_v25, %v923_v19 }
 0x166   : > { %v1133_v23 = vadd.f32 %v1121_v16, %v1025_v3  ;;  %v1104_v48 = vpop.f32.mrf.mxu1  ;;  %v1140_v55 = vadd.f32 %v1090_v49, %v1032_v36 }
 0x167   : > { %1183 = vst [vmem:[%s2216_s29] sm:$0xff] %v1175_v15  ;;  %v1135_v4 = vadd.f32 %v1104_v48, %v1027_v10 }
 0x168   : > { %v1153_v54 = vadd.f32 %v2212_v6, %v1133_v23  ;;  %v1160_v12 = vadd.f32 %v2199_v44, %v1140_v55 }
 0x169   : > { %v1155_v20 = vadd.f32 %v2205_v51, %v1135_v4 }
 0x16a   : > { %v1165_v14 = vmax.f32 %v1153_v54, 0.0  ;;  %v1172_v3 = vmax.f32 %v1160_v12, 0.0 }
 0x16b   : > { %v1167_v61 = vmax.f32 %v1155_v20, 0.0 }
 0x16c   : > { %v1176_v34 = vpack.c.bf16 %v1165_v14, %v1165_v14  ;;  %v1020_v63 = vpop.f32.mrf.mxu3 }
 0x16d   : > { %v1177_v45 = vpack.c.bf16 %v1167_v61, %v1166_v32  ;;  %v1123_v56 = vpop.f32.mrf.mxu2  ;;  %v1034_v44 = vadd.f32 %v1020_v63, %v926_v50 }
 0x16e   : > { %1184 = vst [vmem:[%s2216_s29 + $0x8] sm:$0xf] %v1176_v34  ;;  %v1136_v2 = vadd.f32 %v1123_v56, %v1028_v39  ;;  %v1107_v28 = vpop.f32.mrf.mxu1 }
 0x16f   : > { %1185 = vst [vmem:[%s2216_s29 + $0xc] sm:$0xff] %v1177_v45  ;;  %v1138_v46 = vadd.f32 %v1107_v28, %v1030_v43 }
 0x170   : > { %v1156_v24 = vadd.f32 %v2212_v6, %v1136_v2 }
 0x171   : > { %v1158_v33 = vadd.f32 %v2205_v51, %v1138_v46 }
 0x172   : > { %v1168_v52 = vmax.f32 %v1156_v24, 0.0 }
 0x173   : > { %v1170_v57 = vmax.f32 %v1158_v33, 0.0 }
 0x174   : > { %v1178_v58 = vpack.c.bf16 %v1168_v52, %v1168_v52 }
 0x175   : > { %v1179_v7 = vpack.c.bf16 %v1170_v57, %v1169_v41  ;;  %v1126_v37 = vpop.f32.mrf.mxu2 }
 0x176   : > { %1186 = vst [vmem:[%s2216_s29 + $0x14] sm:$0xf] %v1178_v58  ;;  %v1139_v59 = vadd.f32 %v1126_v37, %v1031_v35  ;;  %v1109_v31 = vpop.f32.mrf.mxu1 }
 0x177   : > { %1187 = vst [vmem:[%s2216_s29 + $0x18] sm:$0xff] %v1179_v7  ;;  %v1141_v21 = vadd.f32 %v1109_v31, %v1033_v62 }
 0x178   : > { %v1159_v29 = vadd.f32 %v2212_v6, %v1139_v59 }
 0x179   : > { %v1161_v0 = vadd.f32 %v2205_v51, %v1141_v21 }
 0x17a   : > { %v1171_v1 = vmax.f32 %v1159_v29, 0.0 }
 0x17b   : > { %v1173_v8 = vmax.f32 %v1161_v0, 0.0 }
 0x17c   : > { %v1180_v10 = vpack.c.bf16 %v1171_v1, %v1171_v1 }
 0x17d   : > { %v1181_v11 = vpack.c.bf16 %v1173_v8, %v1172_v3  ;;  %v1128_v15 = vpop.f32.mrf.mxu2 }
 0x17e   : > { %1188 = vst [vmem:[%s2216_s29 + $0x20] sm:$0xf] %v1180_v10  ;;  %v1142_v51 = vadd.f32 %v1128_v15, %v1034_v44 }
 0x17f   : > { %1189 = vst [vmem:[%s2216_s29 + $0x24] sm:$0xff] %v1181_v11 }
 0x180   : > { %v1162_v18 = vadd.f32 %v2212_v6, %v1142_v51 }
 0x182   : > { %v1174_v26 = vmax.f32 %v1162_v18, 0.0 }
 0x184   : > { %v1182_v16 = vpack.c.bf16 %v1174_v26, %v1174_v26 }
 0x186   : > { %1190 = vst [vmem:[%s2216_s29 + $0x2c] sm:$0xf] %v1182_v16 }
 0x187   : > { %1666 = shalt.err (!%p1663_p6)
}
 0x188   : > { %s1735_s27 = smov 192   ;;  %s1736_s29 = smov 12  }
 0x189   : > { %1566 = dma.vmem_to_hbm [thread:$0]  (%p1808_p3), %s1208_s9, 768, %s1210_s11, %s1192_s20, %s1735_s27, %s1735_s27, %s1736_s29  }
 0x18a PF: > { %p1572_p7 = scmp.ge.s32.totalorder %s1733_s19, 2  ;;  %s1224_s16 = sand.u32 1, %s1705_s12  }
 0x18b   : > { %s1225_s28 = scalar_lea.sflag [#allocation3], %s1224_s16 }
 0x18c   : > { %p1569_p9 = pnand %p1572_p7, %p1817_p8 }
 0x18e   : > { %p1570_p10 = pneg %p1569_p9 }
 0x190   : > { %1700 = dma.done.wait (%p1570_p10), %s1225_s28, 768  }
 0x191   : > { %1702 = vsyncadd (%p1570_p10), %s1225_s28, 4294966528  ;;  %s16_s19 = sadd.s32 1, %s1733_s19   ;;  %s2303_s12 = smov %s1709_s13 }
 0x192   : > { %p13_p11 = scmp.ge.s32.totalorder %s16_s19, 6   ;;  %s2304_s13 = smov %s1713_s14 }
 0x193   : > { %s2305_s14 = smov %s1826_s30  ;;  %s2306_s15 = smov %s1725_s17 }
 0x194   : > { %s2307_s16 = smov %s1729_s18  ;;  %s2308_s17 = smov %s2311_s22 }
 0x195   : > { %s2309_s18 = smov %s2315_s23  ;;  %15 = sbr.rel (!%p13_p11) target bundleno = 5 (0x5), region = 78 }
 0x19a   :  { %1231 = vsyncpa [#allocation3], 1 }
 0x19b   :  { %1233 = vsyncpa [#allocation3 + $0x1], 1 }

</bundles_post_ra>
